<compile_context>
chip_gen: v7x
topology: tpu7x:2x2x1
jax: 0.10.0
libtpu: 0.0.40
codegen_flags: <defaults>
</compile_context>

<pallas_src>
import functools

import numpy as np

import jax
import jax.numpy as jnp
from jax import lax
from jax.experimental import pallas as pl
from jax.experimental.pallas import tpu as pltpu


_SUBLANE_TILE_MAX = 256   # multiple of 32 -> legal for f32/i8/bool packing
_LANE_TILE_MAX = 1024     # multiple of 128 -> unmasked lane-dense stores


def _round_up(x, m):
    return ((x + m - 1) // m) * m


# ---------------------------------------------------------------------------
# Kernels
# ---------------------------------------------------------------------------

def _pad_mask_kernel_2d(len_ref, o_ref):
    """len_ref: (TB, 1) int32 lengths tile; o_ref: (TB, TT) mask tile (1 == padded)."""
    TB, TT = o_ref.shape
    j = pl.program_id(1)                                     # T-tile index
    t = lax.broadcasted_iota(jnp.int32, (TB, TT), 1) + j * TT
    o_ref[...] = (t >= len_ref[...]).astype(o_ref.dtype)


def _pad_mask_kernel_3d(len_ref, o_ref, *, t_axis):
    """Fused broadcast pad mask.

    len_ref: full (B,) int32 lengths in SMEM (per-row scalar reads).
    o_ref:   (1, T1, T2) tile of the (B, D1, D2) broadcast mask.
    t_axis:  which trailing axis (1 or 2) carries the length dimension; the
             other trailing axis is pure broadcast.
    """
    b = pl.program_id(0)
    t_blk = pl.program_id(t_axis)
    t_tile = o_ref.shape[t_axis]
    t = lax.broadcasted_iota(jnp.int32, o_ref.shape, t_axis) + t_blk * t_tile
    o_ref[...] = (t >= len_ref[b]).astype(o_ref.dtype)


# ---------------------------------------------------------------------------
# pallas_call wrappers
# ---------------------------------------------------------------------------

def _pallas_pad_mask_2d(lengths_i32, maxlen, out_dtype):
    """(B, maxlen) pad mask, tiled lane-dense over a parallel 2-D grid."""
    B = int(lengths_i32.shape[0])
    maxlen = int(maxlen)
    TB = min(_round_up(B, 32), _SUBLANE_TILE_MAX)
    TT = min(_round_up(maxlen, 128), _LANE_TILE_MAX)
    grid = (pl.cdiv(B, TB), pl.cdiv(maxlen, TT))
    return pl.pallas_call(
        _pad_mask_kernel_2d,
        out_shape=jax.ShapeDtypeStruct((B, maxlen), out_dtype),
        grid=grid,
        in_specs=[pl.BlockSpec((TB, 1), lambda i, j: (i, 0))],
        out_specs=pl.BlockSpec((TB, TT), lambda i, j: (i, j)),
        compiler_params=pltpu.CompilerParams(
            dimension_semantics=("parallel", "parallel")),
    )(lengths_i32.reshape(B, 1))


def _pallas_pad_mask_3d(lengths_i32, shape3, t_axis, out_dtype):
    """(B, D1, D2) broadcast pad mask written directly by the kernel."""
    B, D1, D2 = (int(d) for d in shape3)
    T1 = min(_round_up(D1, 32), _SUBLANE_TILE_MAX)
    T2 = min(_round_up(D2, 128), _LANE_TILE_MAX)
    grid = (B, pl.cdiv(D1, T1), pl.cdiv(D2, T2))
    kernel = functools.partial(_pad_mask_kernel_3d, t_axis=t_axis)
    return pl.pallas_call(
        kernel,
        out_shape=jax.ShapeDtypeStruct((B, D1, D2), out_dtype),
        grid=grid,
        in_specs=[pl.BlockSpec(memory_space=pltpu.MemorySpace.SMEM)],
        out_specs=pl.BlockSpec((1, T1, T2), lambda b, i, j: (b, i, j)),
        compiler_params=pltpu.CompilerParams(
            dimension_semantics=("parallel", "parallel", "parallel")),
    )(lengths_i32)


# ---------------------------------------------------------------------------
# Output dtype selection (bool directly from the kernel when supported)
# ---------------------------------------------------------------------------

_MASK_DTYPE = None


def _mask_dtype():
    """bool if this Pallas build supports bool outputs in memory, else int8."""
    global _MASK_DTYPE
    if _MASK_DTYPE is None:
        try:
            lens = jnp.array([3, 7, 0, 11, 5], dtype=jnp.int32)
            got = jax.block_until_ready(_pallas_pad_mask_2d(lens, 9, jnp.bool_))
            want = jnp.arange(9, dtype=jnp.int32)[None, :] >= lens[:, None]
            _MASK_DTYPE = jnp.bool_ if bool(jnp.array_equal(got, want)) else jnp.int8
        except Exception:
            # Lowering rejects bool-in-memory on this build: fall back to int8
            # in-kernel (still 4x less write traffic than int32) + one cast.
            _MASK_DTYPE = jnp.int8
    return _MASK_DTYPE


def _to_bool(x):
    return x if x.dtype == jnp.bool_ else x.astype(jnp.bool_)


# ---------------------------------------------------------------------------
# Public API (mirrors espnet.nets.pytorch_backend.nets_utils.make_pad_mask)
# ---------------------------------------------------------------------------

def make_pad_mask(lengths, xs=None, length_dim=-1, maxlen=None):
    """True where padded; broadcast to xs.shape when xs is given."""
    if length_dim == 0:
        raise ValueError("length_dim cannot be 0: {}".format(length_dim))

    lengths_i32 = jnp.asarray(lengths).astype(jnp.int32).reshape(-1)
    bs = int(lengths_i32.shape[0])

    if maxlen is None:
        if xs is None:
            # Output shape is data-dependent -> unavoidable device->host sync
            # for this variant; prefer passing `maxlen` or `xs`.
            maxlen = int(np.max(np.asarray(lengths)))
        else:
            maxlen = int(xs.shape[length_dim])
    else:
        maxlen = int(maxlen)

    dtype = _mask_dtype()

    if xs is None:
        return _to_bool(_pallas_pad_mask_2d(lengths_i32, maxlen, dtype))

    ld = length_dim if length_dim >= 0 else xs.ndim + length_dim
    if xs.ndim == 2 and ld == 1:
        return _to_bool(_pallas_pad_mask_2d(lengths_i32, maxlen, dtype))

    pre = 1
    for d in xs.shape[1:ld]:
        pre *= int(d)
    post = 1
    for d in xs.shape[ld + 1:]:
        post *= int(d)

    if post == 1:
        # (B, ..., T): length dim on the lane axis; broadcast dims flattened.
        m3 = _pallas_pad_mask_3d(lengths_i32, (bs, pre, maxlen), 2, dtype)
        return _to_bool(m3).reshape(xs.shape)
    if pre == 1:
        # (B, T, ...): length dim on the sublane axis; broadcast dims flattened.
        m3 = _pallas_pad_mask_3d(lengths_i32, (bs, maxlen, post), 1, dtype)
        return _to_bool(m3).reshape(xs.shape)

    # TODO(synk): length_dim with broadcast dims on BOTH sides (pre>1 and
    # post>1) falls back to a plain-JAX broadcast of the Pallas (B, T) mask.
    mask = _to_bool(_pallas_pad_mask_2d(lengths_i32, maxlen, dtype))
    ind = tuple(slice(None) if i in (0, ld) else None for i in range(xs.ndim))
    return jnp.broadcast_to(mask[ind], xs.shape)


class MakePadMaskTest:
    """Mirror of the PyTorch module's dispatch on input_names."""

    def __init__(self, input_names):
        self.input_names = tuple(input_names)

    def __call__(self, *args):
        if self.input_names == ('lengths',):
            return make_pad_mask(args[0])
        elif self.input_names == ('lengths', 'length_dim'):
            return make_pad_mask(args[0], length_dim=int(args[1]))
        elif self.input_names == ('lengths', 'maxlen'):
            return make_pad_mask(args[0], maxlen=int(args[1]))
        elif self.input_names == ('lengths', 'length_dim', 'maxlen'):
            return make_pad_mask(args[0], length_dim=int(args[1]), maxlen=int(args[2]))
        elif self.input_names == ('lengths', 'xs'):
            return make_pad_mask(args[0], xs=args[1])
        elif self.input_names == ('lengths', 'xs', 'length_dim'):
            return make_pad_mask(args[0], xs=args[1], length_dim=int(args[2]))
        else:
            raise ValueError(self.input_names)


def _ref_mask(lengths, maxlen):
    t = jnp.arange(maxlen)[None, :]
    return t >= jnp.asarray(lengths)[:, None]


if __name__ == "__main__":
    key = jax.random.PRNGKey(0)
    B, C, T = 4, 3, 8
    lengths = jax.random.randint(key, (B,), minval=1, maxval=T + 1, dtype=jnp.int32)
    lengths2 = jax.random.randint(jax.random.PRNGKey(1), (2,), 1, T + 1, dtype=jnp.int32)
    xs_nct = jnp.zeros((B, C, T), dtype=jnp.float32)      # (B, C, T), length_dim = -1
    xs_btd = jnp.zeros((B, T, C), dtype=jnp.float32)      # (B, T, D), length_dim = 1
    xs_4d = jnp.zeros((2, 3, 2, T), dtype=jnp.float32)    # (B2, C1, C2, T), length_dim = -1

    # ('lengths',)
    m1 = MakePadMaskTest(('lengths',))(lengths)
    jax.block_until_ready(m1)
    assert m1.dtype == jnp.bool_
    assert bool(jnp.all(m1 == _ref_mask(lengths, int(jnp.max(lengths)))))

    # ('lengths', 'maxlen')
    m2 = MakePadMaskTest(('lengths', 'maxlen'))(lengths, T + 4)
    jax.block_until_ready(m2)
    assert m2.shape == (B, T + 4)
    assert bool(jnp.all(m2 == _ref_mask(lengths, T + 4)))

    # ('lengths', 'xs')  -> fused broadcast, length dim on lanes
    m3 = MakePadMaskTest(('lengths', 'xs'))(lengths, xs_nct)
    jax.block_until_ready(m3)
    assert m3.shape == xs_nct.shape
    assert bool(jnp.all(m3 == jnp.broadcast_to(_ref_mask(lengths, T)[:, None, :], xs_nct.shape)))

    # ('lengths', 'xs', 'length_dim') = 1 -> fused broadcast, length dim on sublanes
    m4 = MakePadMaskTest(('lengths', 'xs', 'length_dim'))(lengths, xs_btd, 1)
    jax.block_until_ready(m4)
    assert m4.shape == xs_btd.shape
    assert bool(jnp.all(m4 == jnp.broadcast_to(_ref_mask(lengths, T)[:, :, None], xs_btd.shape)))

    # ('lengths', 'length_dim', 'maxlen')
    m5 = MakePadMaskTest(('lengths', 'length_dim', 'maxlen'))(lengths, -1, T)
    jax.block_until_ready(m5)
    assert bool(jnp.all(m5 == _ref_mask(lengths, T)))

    # 4-D xs, length_dim = -1: middle broadcast dims flattened and fused
    m6 = MakePadMaskTest(('lengths', 'xs'))(lengths2, xs_4d)
    jax.block_until_ready(m6)
    assert m6.shape == xs_4d.shape
    assert bool(jnp.all(m6 == jnp.broadcast_to(_ref_mask(lengths2, T)[:, None, None, :], xs_4d.shape)))

    print("KERNEL_OK")
</pallas_src>

<mosaic_0001>
module attributes {stable_mosaic.version = 11 : i64} {
  func.func @_pad_mask_kernel_2d(%arg0: i32, %arg1: i32, %arg2: memref<32x1xi32, #tpu.memory_space<vmem>>, %arg3: memref<32x128xi32, #tpu.memory_space<vmem>>) attributes {dimension_semantics = [#tpu.dimension_semantics<parallel>, #tpu.dimension_semantics<parallel>], iteration_bounds = array<i64: 1, 1>, scalar_prefetch = 0 : i64, scratch_operands = 0 : i64, tpu.core_type = #tpu.core_type<tc>, window_params = [{transform_indices = @transform_0, window_bounds = array<i64: 32, 1>}, {transform_indices = @transform_1, window_bounds = array<i64: 32, 128>}]} {
    %0 = tpu.iota {dimensions = array<i32: 1>} : vector<32x128xi32>
    %c128_i32 = arith.constant 128 : i32
    %1 = arith.muli %arg1, %c128_i32 : i32
    %2 = vector.broadcast %1 : i32 to vector<32x128xi32>
    %3 = arith.addi %0, %2 : vector<32x128xi32>
    %c0 = arith.constant 0 : index
    %c0_0 = arith.constant 0 : index
    %4 = vector.load %arg2[%c0, %c0_0] : memref<32x1xi32, #tpu.memory_space<vmem>>, vector<32x1xi32>
    %5 = vector.broadcast %4 : vector<32x1xi32> to vector<32x128xi32>
    %6 = arith.cmpi sge, %3, %5 : vector<32x128xi32>
    %c0_1 = arith.constant 0 : index
    %c0_2 = arith.constant 0 : index
    %7 = vector.load %arg3[%c0_1, %c0_2] : memref<32x128xi32, #tpu.memory_space<vmem>>, vector<32x128xi32>
    %8 = arith.extui %6 : vector<32x128xi1> to vector<32x128xi32>
    %cst = arith.constant dense<0> : vector<32x128xi32>
    %9 = arith.cmpi ne, %7, %cst : vector<32x128xi32>
    tpu.vector_store %arg3[%c0_1, %c0_2], %8 {strides = array<i32>} : memref<32x128xi32, #tpu.memory_space<vmem>>, vector<32x128xi32>,
    return
  }
  func.func @transform_0(%arg0: i32, %arg1: i32) -> (i32, i32) {
    %c0_i32 = arith.constant 0 : i32
    %c0_i32_0 = arith.constant 0 : i32
    return %arg0, %c0_i32 : i32, i32
  }
  func.func @transform_1(%arg0: i32, %arg1: i32) -> (i32, i32) {
    %c0_i32 = arith.constant 0 : i32
    return %arg0, %arg1 : i32, i32
  }
}

module attributes {stable_mosaic.version = 11 : i64} {
  func.func @_pad_mask_kernel_2d(%arg0: i32, %arg1: i32, %arg2: memref<32x1xi32, #tpu.memory_space<vmem>>, %arg3: memref<32x128xi8, #tpu.memory_space<vmem>>) attributes {dimension_semantics = [#tpu.dimension_semantics<parallel>, #tpu.dimension_semantics<parallel>], iteration_bounds = array<i64: 1, 1>, scalar_prefetch = 0 : i64, scratch_operands = 0 : i64, tpu.core_type = #tpu.core_type<tc>, window_params = [{transform_indices = @transform_0, window_bounds = array<i64: 32, 1>}, {transform_indices = @transform_1, window_bounds = array<i64: 32, 128>}]} {
    %0 = tpu.iota {dimensions = array<i32: 1>} : vector<32x128xi32>
    %c128_i32 = arith.constant 128 : i32
    %1 = arith.muli %arg1, %c128_i32 : i32
    %2 = vector.broadcast %1 : i32 to vector<32x128xi32>
    %3 = arith.addi %0, %2 : vector<32x128xi32>
    %c0 = arith.constant 0 : index
    %c0_0 = arith.constant 0 : index
    %4 = vector.load %arg2[%c0, %c0_0] : memref<32x1xi32, #tpu.memory_space<vmem>>, vector<32x1xi32>
    %5 = vector.broadcast %4 : vector<32x1xi32> to vector<32x128xi32>
    %6 = arith.cmpi sge, %3, %5 : vector<32x128xi32>
    %7 = arith.extui %6 : vector<32x128xi1> to vector<32x128xi8>
    %c0_1 = arith.constant 0 : index
    %c0_2 = arith.constant 0 : index
    %8 = vector.load %arg3[%c0_1, %c0_2] : memref<32x128xi8, #tpu.memory_space<vmem>>, vector<32x128xi8>
    tpu.vector_store %arg3[%c0_1, %c0_2], %7 {strides = array<i32>} : memref<32x128xi8, #tpu.memory_space<vmem>>, vector<32x128xi8>,
    return
  }
  func.func @transform_0(%arg0: i32, %arg1: i32) -> (i32, i32) {
    %c0_i32 = arith.constant 0 : i32
    %c0_i32_0 = arith.constant 0 : i32
    return %arg0, %c0_i32 : i32, i32
  }
  func.func @transform_1(%arg0: i32, %arg1: i32) -> (i32, i32) {
    %c0_i32 = arith.constant 0 : i32
    return %arg0, %arg1 : i32, i32
  }
}

</mosaic_0001>

<bundles_post_ra>
// kernel: tpu_custom_call.1
= control target key start
LH: loop header
LB: loop body
LE: loop exit
PB: predicated region body
PF: predicated region fallthrough
CT: control target
= control target key end

     0   :  { %v83_v1 = vmov 0   ;;  %v8_v2 = vlaneseq  ;;  %s100_s0 = inlined_call_operand.vmem [shape: s32[5,1], index: 0, kind: input, shape index: {}]   ;;  %s101_s1 = inlined_call_operand.vmem [shape: s32[5,9], index: 1, kind: output, shape index: {}]  }
   0x1   :  { %v13_v0 = vld [vmem:[%s100_s0] sm:$0xff]  ;;  %82 = vset.pattern.permute.xlu0 %v83_v1 }
   0x2   :  { %18 = vperm.xlu0 %82, %v13_v0   ;;  %v9_v3 = vand.u32 127, %v8_v2 }
  0x81   :  { %v19_v4 = vpop.permute.xlu0 %18 }
  0x82   :  { %vm29_vm0 = vcmp.ge.s32.totalorder %v9_v3, %v19_v4 }
  0x83   :  { %v33_v5 = vsel %vm29_vm0, 1, %v83_v1 }
  0x84   :  { %71 = vst [vmem:[%s101_s1] sm:$0xff] %v33_v5 }

// kernel: tpu_custom_call.1
= control target key start
LH: loop header
LB: loop body
LE: loop exit
PB: predicated region body
PF: predicated region fallthrough
CT: control target
= control target key end

     0   :  { %v148_v2 = vmov 0   ;;  %s187_s0 = inlined_call_operand.vmem [shape: s32[4,1], index: 0, kind: input, shape index: {}]   ;;  %s188_s1 = inlined_call_operand.hbm [shape: s8[4,6], index: 1, kind: output, shape index: {}]  }
   0x1   :  { %v18_v0 = vld [vmem:[%s187_s0 + $0x10] sm:$0xff]  ;;  %v16_v1 = vld [vmem:[%s187_s0] sm:$0xff]  ;;  %123 = vset.pattern.permute.xlu1 %v148_v2  ;;  %122 = vset.pattern.permute.xlu0 %v148_v2 }
   0x2   :  { %6 = vsyncpa [#allocation3], 0  ;;  %27 = vperm.xlu1 %123, %v18_v0   ;;  %21 = vperm.xlu0 %122, %v16_v1   ;;  %v19_v3 = vld [vmem:[%s187_s0 + $0x18] sm:$0xff]  ;;  %v17_v4 = vld [vmem:[%s187_s0 + $0x8] sm:$0xff]  ;;  %v11_v5 = vlaneseq  ;;  %v149_v6 = vmov 1966171168  }
   0x3   :  { %v42_v7 = vunpack.c.l.s4 %v149_v6 }
   0x4   :  { %v12_v10 = vand.u32 127, %v11_v5  ;;  %v45_v12 = vshrl.u32 %v11_v5, 7 }
   0x5   :  { %v43_v11 = vunpack.c.0.s8 %v42_v7 }
   0x6   :  { %30 = vperm.xlu1 %123, %v19_v3   ;;  %24 = vperm.xlu0 %122, %v17_v4  }
   0x7   :  { %v46_v15 = vsub.s32 %v43_v11, %v45_v12 }
  0x81   :  { %v28_v8 = vpop.permute.xlu1 %27  ;;  %v22_v9 = vpop.permute.xlu0 %21 }
  0x82   :  { %vm34_vm0 = vcmp.ge.s32.totalorder %v12_v10, %v28_v8  ;;  %vm32_vm3 = vcmp.ge.s32.totalorder %v12_v10, %v22_v9 }
  0x85   :  { %v31_v13 = vpop.permute.xlu1 %30  ;;  %v25_v14 = vpop.permute.xlu0 %24 }
  0x86   :  { %vm35_vm1 = vcmp.ge.s32.totalorder %v12_v10, %v31_v13  ;;  %vm33_vm2 = vcmp.ge.s32.totalorder %v12_v10, %v25_v14 }
  0x87   :  { %vm37_vm4 = vmpackc.low %vm35_vm1, %vm34_vm0 }
  0x88   :  { %vm36_vm5 = vmpackc.low %vm33_vm2, %vm32_vm3 }
  0x89   :  { %vm38_vm6 = vmpackc.even %vm37_vm4, %vm36_vm5 }
  0x8a   :  { %v39_v16 = vsel %vm38_vm6, 16843009, %v148_v2 }
  0x8b   :  { %v40_v17 = vcombine.high %v39_v16, %v39_v16  ;;  %v47_v18 = vrot.slane %v39_v16, %v46_v15 }
  0x8d   :  { %v54_v19 = vrot.slane %v40_v17, %v46_v15  ;;  %v55_v20 = vcombine.high %v47_v18, %v47_v18  ;;  %v63_v21 = vrot.slane %v47_v18, %v46_v15  ;;  %113 = vst.sshfl [vmem:[#allocation2] sm:$0x1 pattern:$0x73625140] %v47_v18 }
  0x8f   :  { %v56_v22 = vcombine.high %v54_v19, %v54_v19  ;;  %v70_v23 = vrot.slane %v54_v19, %v46_v15  ;;  %v77_v24 = vrot.slane %v55_v20, %v46_v15  ;;  %v85_v25 = vcombine.high %v63_v21, %v63_v21  ;;  %114 = vst.sshfl [vmem:[#allocation2 + $0x1] sm:$0x1 pattern:$0x73625140] %v55_v20 }
  0x90   :  { %115 = vst.sshfl [vmem:[#allocation2 + $0x4] sm:$0x1 pattern:$0x73625140] %v54_v19 }
  0x91   :  { %v84_v26 = vrot.slane %v56_v22, %v46_v15  ;;  %v86_v27 = vcombine.high %v70_v23, %v70_v23  ;;  %v87_v28 = vcombine.high %v77_v24, %v77_v24  ;;  %91 = vst [vmem:[#allocation2 + $0x2] sm:$0x1] %v85_v25  ;;  %116 = vst.sshfl [vmem:[#allocation2 + $0x5] sm:$0x1 pattern:$0x73625140] %v56_v22 }
  0x93   :  { %v88_v29 = vcombine.high %v84_v26, %v84_v26  ;;  %92 = vst [vmem:[#allocation2 + $0x3] sm:$0x1] %v87_v28  ;;  %95 = vst [vmem:[#allocation2 + $0x6] sm:$0x1] %v86_v27 }
  0x95   :  { %96 = vst [vmem:[#allocation2 + $0x7] sm:$0x1] %v88_v29 }
  0x96   :  { %101 = vsyncadd [#allocation3], 112  ;;  %s150_s0 = smov [#allocation2]  }
  0x97   :  { %s102_s14 = sshll.u32 %s150_s0, 4  ;;  %s103_s14 = int_to_ptr.vmem [resolvable:$true] %s102_s14 }
  0x98   :  { %s124_s15 = scalar_lea.vmem %s103_s14, 16  ;;  %s128_s16 = scalar_lea.vmem %s103_s14, 128 }
  0x99   :  { %p125_p0 = scmp.ne.s32.totalorder %s103_s14, %s124_s15  ;;  %p129_p1 = scmp.lt.s32.totalorder %s103_s14, %s103_s14 }
  0x9a   :  { %p130_p2 = scmp.lt.s32.totalorder %s128_s16, %s124_s15 }
  0x9c   :  { %p131_p3 = por %p130_p2, %p129_p1 }
  0x9e   :  { %p132_p4 = pnand %p131_p3, %p125_p0 }
  0xa0   :  { %135 = shalt.err (!%p132_p4)
}
  0xa1   :  { %s136_s19 = scalar_lea.hbm %s188_s1, 16 }
  0xa2   :  { %p137_p5 = scmp.ne.s32.totalorder %s188_s1, %s136_s19  ;;  %p140_p6 = scmp.lt.u32.totalorder %s136_s19, %s188_s1 }
  0xa4   :  { %p142_p7 = pnand %p140_p6, %p137_p5 }
  0xa6   :  { %145 = shalt.err (!%p142_p7)
}
  0xa7   :  { %s151_s24 = smov 16   ;;  %s152_s25 = smov 1  }
  0xa8   :  { %108 = dma.vmem_to_hbm [thread:$0]  %s103_s14, 16, %s188_s1, [#allocation3], %s151_s24, %s151_s24, %s152_s25  }
  0xa9   :  { %146 = dma.done.wait [#allocation3], 128  }
  0xaa   :  { %147 = vsyncadd [#allocation3], 4294967168 }
  0xab   :  { %112 = vsyncpa [#allocation3], 1 }

</bundles_post_ra>
